<compile_context>
chip_gen: v7x
topology: tpu7x:2x2x1
jax: 0.10.0
libtpu: 0.0.40
codegen_flags: <defaults>
</compile_context>

<pallas_src>
import math

import jax
import jax.numpy as jnp
from jax import lax
from jax.experimental import pallas as pl
from jax.experimental.pallas import tpu as pltpu

FEATURE_DIM = 64       # C  (per-item channels; model hard-codes view(B, N, 64))
TRANSFORMER_DIM = 128  # D  (fc1 output width)
POOL_OUT = 128         # P  (AdaptiveAvgPool1d output size)


# ----------------------------- in-kernel math helpers -----------------------------
_SQRT_2_OVER_PI = math.sqrt(2.0 / math.pi)


def _gelu(x):
    # tanh-approximation GELU (tanh runs on the EUP slot). ~1e-3 max abs
    # deviation from the exact erf GELU used by nn.GELU().
    return 0.5 * x * (1.0 + jnp.tanh(_SQRT_2_OVER_PI * (x + 0.044715 * (x * x * x))))


# ----------------------------- stage A kernel: rfft + spectral energy -----------------------------
def _rfft_energy_kernel(x_ref, dftf_ref, sel_ref, e_ref):
    # x_ref:    (N, GC)     bf16  time-domain signal, G batch items on lanes
    # dftf_ref: (2*Fp, N)   bf16  [cos; -sin] ortho rfft matrix (rows F..Fp-1 zero)
    # sel_ref:  (GC, 128)   f32   per-group channel-sum selection, zero-padded lanes
    # e_ref:    (Fp, 128)   f32   lane-dense per-group energy (cols >= G are zero)
    xf = jnp.dot(dftf_ref[...], x_ref[...],
                 preferred_element_type=jnp.float32)           # (2Fp, GC) = [xr; xi]
    fp = xf.shape[0] // 2
    sq = xf[:fp] * xf[:fp] + xf[fp:] * xf[fp:]                  # (Fp, GC)  f32
    # keep the energy reduction in f32 (mask threshold is a hard compare)
    e_ref[...] = jnp.dot(sq, sel_ref[...], preferred_element_type=jnp.float32)


# ------------- stage B kernel: DFT + weighting + irfft + ICB + pool + fc1 -------------
def _sleepfim_main_kernel(x_ref, mask2_ref, dftf_ref, expand_ref, wc_ref, idft_ref,
                          w12_ref, b1_ref, w2pn_ref, b2_ref, w3_ref, b3_ref,
                          wfc_ref, bfc_ref, pool_ref, out_ref):
    f32 = jnp.float32
    bf16 = jnp.bfloat16

    # forward ortho rDFT recomputed in-kernel (cheap) -> no f32 HBM round trip
    xf = jnp.dot(dftf_ref[...], x_ref[...], preferred_element_type=f32)  # (2Fp, GC)
    two_fp = xf.shape[0]
    fp = two_fp // 2

    # expand the compact per-group mask (2Fp, 128) to per-channel lanes (2Fp, GC)
    m2 = jnp.dot(mask2_ref[...], expand_ref[...], preferred_element_type=f32)

    wc = wc_ref[...]                                   # (4, GC): [w_r, w_i, wh_r, wh_i]
    wr_eff = wc[0:1] + m2 * wc[2:3]                    # (2Fp, GC)
    wi_eff = wc[1:2] + m2 * wc[3:4]

    # complex weighting on the stacked [xr; xi] slab without a concat:
    #   z_cat[:Fp] = xr*wr - xi*wi ; z_cat[Fp:] = xi*wr + xr*wi
    row2 = lax.broadcasted_iota(jnp.int32, (two_fp, 1), 0)
    sgn = jnp.where(row2 < fp, -1.0, 1.0)              # (2Fp, 1)
    xf_sw = pltpu.roll(xf, shift=fp, axis=0)           # halves swapped: [xi; xr]
    z_cat = (xf * wr_eff + xf_sw * (sgn * wi_eff)).astype(bf16)   # (2Fp, GC)

    # irfft (ortho) as ONE fused matmul over K = 2*Fp (real|imag columns of idft)
    z = jnp.dot(idft_ref[...], z_cat, preferred_element_type=f32)  # (N, GC)

    # Conv1d(k=3, padding=1) taps via sublane roll + boundary zeroing
    n = z.shape[0]
    gc = z.shape[1]
    row = lax.broadcasted_iota(jnp.int32, (n, 1), 0)
    z_prev = jnp.where(row > 0, pltpu.roll(z, shift=1, axis=0), 0.0)          # z[n-1]
    z_next = jnp.where(row < n - 1, pltpu.roll(z, shift=n - 1, axis=0), 0.0)  # z[n+1]

    zb, zpb, znb = z.astype(bf16), z_prev.astype(bf16), z_next.astype(bf16)

    # IntraChannelBlock: conv1 and conv2's center tap share LHS z -> one fused
    # (N, GC) @ (GC, 2*GC) push (256-wide output slab on v6e/v7x at G=2).
    x12 = jnp.dot(zb, w12_ref[...], preferred_element_type=f32)    # (N, 2GC)
    x1 = x12[:, :gc] + b1_ref[...]
    x2 = (x12[:, gc:] + b2_ref[...]
          + jnp.dot(zpb, w2pn_ref[0], preferred_element_type=f32)
          + jnp.dot(znb, w2pn_ref[1], preferred_element_type=f32))
    g1 = _gelu(x1)
    g2 = _gelu(x2)
    h = (x1 * g2 + x2 * g1).astype(bf16)               # out1 + out2 (dropout p=0)
    y = jnp.dot(h, w3_ref[...], preferred_element_type=f32) + b3_ref[...]   # (N, GC)

    # AdaptiveAvgPool1d(P) first (linear, rows sum to 1), then block-diag fc1:
    # exact reordering of fc1->pool that shrinks both matmuls (P < N, D > C).
    p = jnp.dot(pool_ref[...], y.astype(bf16), preferred_element_type=f32)  # (P, GC)
    out_ref[...] = (jnp.dot(p.astype(bf16), wfc_ref[...],
                            preferred_element_type=f32) + bfc_ref[...])     # (P, GD)


# ----------------------------- BlockSpec helpers -----------------------------
def _const_spec(shape):
    nd = len(shape)
    return pl.BlockSpec(tuple(shape), lambda b, _n=nd: (0,) * _n)


def _batch_spec(tail):
    nt = len(tail)
    return pl.BlockSpec((None,) + tuple(tail), lambda b, _n=nt: (b,) + (0,) * _n)


# ----------------------------- host-side constant construction -----------------------------
def _dft_matrices(N, Fp):
    """Fused ortho real-DFT matrices, frequency axis zero-padded F -> Fp."""
    F = N // 2 + 1
    n = jnp.arange(N)
    f = jnp.arange(F)
    scale = 1.0 / math.sqrt(N)

    ang_f = (2.0 * jnp.pi / N) * ((f[:, None] * n[None, :]) % N).astype(jnp.float32)
    cosF = jnp.cos(ang_f) * scale                          # (F, N)
    sinF = jnp.sin(ang_f) * scale
    pad_f = jnp.zeros((Fp - F, N), jnp.float32)
    dft_fwd = jnp.concatenate([cosF, pad_f, -sinF, pad_f], axis=0)   # (2Fp, N): [xr; xi]

    if N % 2 == 0:
        alpha = jnp.where((f == 0) | (f == N // 2), 1.0, 2.0).astype(jnp.float32)
    else:
        alpha = jnp.where(f == 0, 1.0, 2.0).astype(jnp.float32)
    ang_i = (2.0 * jnp.pi / N) * ((n[:, None] * f[None, :]) % N).astype(jnp.float32)
    cosI = jnp.cos(ang_i) * (alpha * scale)[None, :]       # (N, F)
    sinI = -jnp.sin(ang_i) * (alpha * scale)[None, :]      # (N, F)
    pad_i = jnp.zeros((N, Fp - F), jnp.float32)
    dft_inv = jnp.concatenate([cosI, pad_i, sinI, pad_i], axis=1)    # (N, 2Fp)
    return dft_fwd, dft_inv


def _adaptive_pool_matrix(L_in, L_out):
    """Row-stochastic matrix reproducing nn.AdaptiveAvgPool1d(L_out)."""
    j = jnp.arange(L_out)
    start = (j * L_in) // L_out
    end = ((j + 1) * L_in + L_out - 1) // L_out
    n = jnp.arange(L_in)
    mask = (n[None, :] >= start[:, None]) & (n[None, :] < end[:, None])
    return mask.astype(jnp.float32) / (end - start)[:, None].astype(jnp.float32)


def _choose_lane_stack(B):
    # G=4 (GC=256) fills the 256x256 MXU of v6e/v7x and still leaves >=2
    # parallel grid steps when B>=8; G=2 is full-width on v5e's 128x128 MXU.
    if B >= 8:
        return 4
    if B >= 2:
        return 2
    return 1


def init_params(key):
    """Deterministic synthetic parameters with the same shapes as the PyTorch module."""
    ks = jax.random.split(key, 11)
    C, D = FEATURE_DIM, TRANSFORMER_DIM

    def unif(k, shape, fan_in):
        b = 1.0 / math.sqrt(fan_in)
        return jax.random.uniform(k, shape, jnp.float32, -b, b)

    return dict(
        complex_weight=0.02 * jax.random.normal(ks[0], (C, 2), jnp.float32),
        complex_weight_high=0.02 * jax.random.normal(ks[1], (C, 2), jnp.float32),
        threshold_param=0.5 * jax.random.uniform(ks[2], (1,), jnp.float32),
        conv1_w=unif(ks[3], (C, C, 1), C), conv1_b=unif(ks[4], (C,), C),
        conv2_w=unif(ks[5], (C, C, 3), 3 * C), conv2_b=unif(ks[6], (C,), 3 * C),
        conv3_w=unif(ks[7], (C, C, 1), C), conv3_b=unif(ks[8], (C,), C),
        fc1_w=unif(ks[9], (D, C), C), fc1_b=unif(ks[10], (D,), C),
    )


# ----------------------------- full forward -----------------------------
def sleep_fim_forward(eeg1, params, lane_stack=None):
    # eeg1: (B, 64, N) -> transpose(1, 2) -> (B, N, C=64)
    # cast to bf16 BEFORE the lane-stacking pass (halves that extra HBM pass);
    # downstream MXU operands are bf16 with f32 accumulation anyway.
    x = jnp.transpose(eeg1, (0, 2, 1)).astype(jnp.bfloat16)
    B, N, C = x.shape
    F = N // 2 + 1
    Fp = ((F + 7) // 8) * 8                 # sublane-aligned padded frequency count
    G = lane_stack or _choose_lane_stack(B)
    D, P = TRANSFORMER_DIM, POOL_OUT
    GC, GD = G * C, G * D

    Bg = (B + G - 1) // G
    B_pad = Bg * G
    if B_pad != B:
        x = jnp.concatenate([x, jnp.zeros((B_pad - B, N, C), jnp.bfloat16)], axis=0)

    # lane-stack G batch items: (Bg, N, G*C), layout [bg, n, g*C + c]
    x_st = x.reshape(Bg, G, N, C).transpose(0, 2, 1, 3).reshape(Bg, N, GC)

    dft_fwd, dft_inv = _dft_matrices(N, Fp)
    dft_fwd_b = dft_fwd.astype(jnp.bfloat16)
    pool_mat = _adaptive_pool_matrix(N, P)

    # lane-dense (GC, 128) channel-sum selection: column g sums group g's C channels
    sel = jnp.pad(jnp.repeat(jnp.eye(G, dtype=jnp.float32), C, axis=0),
                  ((0, 0), (0, 128 - G)))                            # (GC, 128)

    # ---- stage A: fused rfft-as-matmul + per-item spectral energy (Pallas) ----
    e = pl.pallas_call(
        _rfft_energy_kernel,
        out_shape=jax.ShapeDtypeStruct((Bg, Fp, 128), jnp.float32),
        grid=(Bg,),
        in_specs=[_batch_spec((N, GC)), _const_spec((2 * Fp, N)),
                  _const_spec((GC, 128))],
        out_specs=_batch_spec((Fp, 128)),
        compiler_params=pltpu.CompilerParams(dimension_semantics=("parallel",)),
    )(x_st, dft_fwd_b, sel)

    # ---- glue: median / quantile threshold (couples batches; plain XLA) ----
    # TODO(synk): torch.median/torch.quantile have no clean single-grid-step
    # Pallas equivalent (batch-coupled sort/quantile), so they stay in XLA glue.
    energy = e[:, :F, :G].transpose(0, 2, 1).reshape(B_pad, F)[:B]   # (B, F)
    med = jnp.sort(energy, axis=1)[:, (F - 1) // 2]                  # torch lower median
    normalized = energy / (med[:, None] + 1e-6)
    threshold = jnp.quantile(normalized, params["threshold_param"][0], method="linear")
    freq_mask = (normalized > threshold).astype(jnp.float32)         # (B, F)
    if B_pad != B:
        freq_mask = jnp.concatenate(
            [freq_mask, jnp.zeros((B_pad - B, F), jnp.float32)], axis=0)
    # compact lane-padded mask, doubled along the frequency axis to cover [xr; xi]
    mpad = jnp.pad(freq_mask, ((0, 0), (0, Fp - F)))                 # (B_pad, Fp)
    mst = jnp.pad(mpad.reshape(Bg, G, Fp).transpose(0, 2, 1),
                  ((0, 0), (0, 0), (0, 128 - G)))                    # (Bg, Fp, 128)
    mask2 = jnp.concatenate([mst, mst], axis=1).astype(jnp.bfloat16)  # (Bg, 2Fp, 128)

    # in-kernel mask expansion matrix: row g -> ones on channels g*C..(g+1)*C-1
    expand = jnp.pad(jnp.repeat(jnp.eye(G, dtype=jnp.float32), C, axis=1),
                     ((0, 128 - G), (0, 0))).astype(jnp.bfloat16)    # (128, GC)

    # ---- parameter plumbing: tile per-channel weights / block-diagonalize convs ----
    def tile_g(v):
        return jnp.tile(v, G)

    wc = jnp.stack([tile_g(params["complex_weight"][:, 0]),
                    tile_g(params["complex_weight"][:, 1]),
                    tile_g(params["complex_weight_high"][:, 0]),
                    tile_g(params["complex_weight_high"][:, 1])])    # (4, GC) f32

    eye_g = jnp.eye(G, dtype=jnp.float32)
    bd = lambda w: jnp.kron(eye_g, w)                                # block-diagonal
    w1 = bd(params["conv1_w"][:, :, 0].T)                            # (GC, GC)
    w2c = bd(params["conv2_w"][:, :, 1].T)                           # center tap
    w12 = jnp.concatenate([w1, w2c], axis=1).astype(jnp.bfloat16)    # (GC, 2GC)
    w2pn = jnp.stack([bd(params["conv2_w"][:, :, 0].T),              # prev tap
                      bd(params["conv2_w"][:, :, 2].T)]              # next tap
                     ).astype(jnp.bfloat16)                          # (2, GC, GC)
    w3 = bd(params["conv3_w"][:, :, 0].T).astype(jnp.bfloat16)       # (GC, GC)
    wfc = bd(params["fc1_w"].T).astype(jnp.bfloat16)                 # (GC, GD)
    b1 = tile_g(params["conv1_b"])[None, :]
    b2 = tile_g(params["conv2_b"])[None, :]
    b3 = tile_g(params["conv3_b"])[None, :]
    bfc = tile_g(params["fc1_b"])[None, :]                           # (1, GD)

    # ---- stage B: DFT + weighting + irfft + ICB + pool + fc1, fully fused ----
    out_st = pl.pallas_call(
        _sleepfim_main_kernel,
        out_shape=jax.ShapeDtypeStruct((Bg, P, GD), jnp.float32),
        grid=(Bg,),
        in_specs=[_batch_spec((N, GC)), _batch_spec((2 * Fp, 128)),
                  _const_spec((2 * Fp, N)), _const_spec((128, GC)),
                  _const_spec((4, GC)), _const_spec((N, 2 * Fp)),
                  _const_spec((GC, 2 * GC)), _const_spec((1, GC)),
                  _const_spec((2, GC, GC)), _const_spec((1, GC)),
                  _const_spec((GC, GC)), _const_spec((1, GC)),
                  _const_spec((GC, GD)), _const_spec((1, GD)),
                  _const_spec((P, N))],
        out_specs=_batch_spec((P, GD)),
        compiler_params=pltpu.CompilerParams(dimension_semantics=("parallel",)),
    )(x_st, mask2, dft_fwd_b, expand, wc, dft_inv.astype(jnp.bfloat16),
      w12, b1, w2pn, b2, w3, b3, wfc, bfc, pool_mat.astype(jnp.bfloat16))

    # un-stack the lane-packed batch items: (Bg, P, G*D) -> (B, P, D)
    out = out_st.reshape(Bg, P, G, D).transpose(0, 2, 1, 3).reshape(B_pad, P, D)[:B]
    return [out]


if __name__ == "__main__":
    key = jax.random.PRNGKey(0)
    k_params, k_x = jax.random.split(key)
    params = init_params(k_params)

    B, C, N = 2, FEATURE_DIM, 256
    eeg1 = jax.random.normal(k_x, (B, C, N), dtype=jnp.float32)   # (batch, 64, seq)

    out = sleep_fim_forward(eeg1, params)[0]
    out = jax.block_until_ready(out)
    assert out.shape == (B, POOL_OUT, TRANSFORMER_DIM), out.shape
    assert bool(jnp.isfinite(out).all())
    print("KERNEL_OK")
</pallas_src>

<mosaic_0001>
module attributes {stable_mosaic.version = 11 : i64} {
  func.func @_rfft_energy_kernel(%arg0: i32, %arg1: memref<1x256x128xbf16, #tpu.memory_space<vmem>>, %arg2: memref<272x256xbf16, #tpu.memory_space<vmem>>, %arg3: memref<128x128xf32, #tpu.memory_space<vmem>>, %arg4: memref<1x136x128xf32, #tpu.memory_space<vmem>>) attributes {dimension_semantics = [#tpu.dimension_semantics<parallel>], iteration_bounds = array<i64: 1>, scalar_prefetch = 0 : i64, scratch_operands = 0 : i64, tpu.core_type = #tpu.core_type<tc>, window_params = [{transform_indices = @transform_0, window_bounds = array<i64: 1, 256, 128>}, {pipeline_mode = #tpu.pipeline_mode<synchronous>, transform_indices = @transform_1, window_bounds = array<i64: 272, 256>}, {pipeline_mode = #tpu.pipeline_mode<synchronous>, transform_indices = @transform_2, window_bounds = array<i64: 128, 128>}, {transform_indices = @transform_3, window_bounds = array<i64: 1, 136, 128>}]} {
    %c0 = arith.constant 0 : index
    %c0_0 = arith.constant 0 : index
    %0 = vector.load %arg2[%c0, %c0_0] : memref<272x256xbf16, #tpu.memory_space<vmem>>, vector<272x256xbf16>
    %c0_1 = arith.constant 0 : index
    %c0_2 = arith.constant 0 : index
    %c0_3 = arith.constant 0 : index
    %1 = vector.load %arg1[%c0_1, %c0_2, %c0_3] : memref<1x256x128xbf16, #tpu.memory_space<vmem>>, vector<1x256x128xbf16>
    %2 = vector.shape_cast %1 : vector<1x256x128xbf16> to vector<256x128xbf16>
    %cst = arith.constant dense<0.000000e+00> : vector<272x128xf32>
    %3 = tpu.matmul %0, %2, %cst {dimension_numbers = #tpu.dot_dimension_numbers<[1], [0], [0], [1], [0, 0, 1, 1], [], []>} : vector<272x256xbf16>, vector<256x128xbf16>, vector<272x128xf32> -> vector<272x128xf32>
    %4 = vector.extract_strided_slice %3 {offsets = [0, 0], sizes = [136, 128], strides = [1, 1]} : vector<272x128xf32> to vector<136x128xf32>
    %5 = vector.extract_strided_slice %3 {offsets = [0, 0], sizes = [136, 128], strides = [1, 1]} : vector<272x128xf32> to vector<136x128xf32>
    %6 = arith.mulf %4, %5 : vector<136x128xf32>
    %7 = vector.extract_strided_slice %3 {offsets = [136, 0], sizes = [136, 128], strides = [1, 1]} : vector<272x128xf32> to vector<136x128xf32>
    %8 = vector.extract_strided_slice %3 {offsets = [136, 0], sizes = [136, 128], strides = [1, 1]} : vector<272x128xf32> to vector<136x128xf32>
    %9 = arith.mulf %7, %8 : vector<136x128xf32>
    %10 = arith.addf %6, %9 : vector<136x128xf32>
    %c0_4 = arith.constant 0 : index
    %c0_5 = arith.constant 0 : index
    %11 = vector.load %arg3[%c0_4, %c0_5] : memref<128x128xf32, #tpu.memory_space<vmem>>, vector<128x128xf32>
    %cst_6 = arith.constant dense<0.000000e+00> : vector<136x128xf32>
    %12 = tpu.matmul %10, %11, %cst_6 {dimension_numbers = #tpu.dot_dimension_numbers<[1], [0], [0], [1], [0, 0, 1, 1], [], []>} : vector<136x128xf32>, vector<128x128xf32>, vector<136x128xf32> -> vector<136x128xf32>
    %c0_7 = arith.constant 0 : index
    %c0_8 = arith.constant 0 : index
    %c0_9 = arith.constant 0 : index
    %13 = vector.load %arg4[%c0_7, %c0_8, %c0_9] : memref<1x136x128xf32, #tpu.memory_space<vmem>>, vector<1x136x128xf32>
    %14 = vector.shape_cast %13 : vector<1x136x128xf32> to vector<136x128xf32>
    %15 = vector.shape_cast %12 : vector<136x128xf32> to vector<1x136x128xf32>
    tpu.vector_store %arg4[%c0_7, %c0_8, %c0_9], %15 {strides = array<i32>} : memref<1x136x128xf32, #tpu.memory_space<vmem>>, vector<1x136x128xf32>,
    return
  }
  func.func @transform_0(%arg0: i32) -> (i32, i32, i32) {
    %c0_i32 = arith.constant 0 : i32
    %c0_i32_0 = arith.constant 0 : i32
    %c0_i32_1 = arith.constant 0 : i32
    return %arg0, %c0_i32, %c0_i32_0 : i32, i32, i32
  }
  func.func @transform_1(%arg0: i32) -> (i32, i32) {
    %c0_i32 = arith.constant 0 : i32
    %c0_i32_0 = arith.constant 0 : i32
    %c0_i32_1 = arith.constant 0 : i32
    return %c0_i32, %c0_i32_0 : i32, i32
  }
  func.func @transform_2(%arg0: i32) -> (i32, i32) {
    %c0_i32 = arith.constant 0 : i32
    %c0_i32_0 = arith.constant 0 : i32
    %c0_i32_1 = arith.constant 0 : i32
    return %c0_i32, %c0_i32_0 : i32, i32
  }
  func.func @transform_3(%arg0: i32) -> (i32, i32, i32) {
    %c0_i32 = arith.constant 0 : i32
    %c0_i32_0 = arith.constant 0 : i32
    %c0_i32_1 = arith.constant 0 : i32
    return %arg0, %c0_i32, %c0_i32_0 : i32, i32, i32
  }
}

</mosaic_0001>

<bundles_post_ra>
// kernel: tpu_custom_call.1
= control target key start
LH: loop header
LB: loop body
LE: loop exit
PB: predicated region body
PF: predicated region fallthrough
CT: control target
= control target key end

     0   :  { %8 = vsyncpa [#allocation3], 0  ;;  %s1420_s0 = inlined_call_operand.hbm [shape: bf16[1,256,128], index: 0, kind: input, shape index: {}]   ;;  %s1421_s1 = inlined_call_operand.hbm [shape: bf16[272,256], index: 1, kind: input, shape index: {}]   ;;  %s1422_s2 = inlined_call_operand.hbm [shape: f32[128,128], index: 2, kind: input, shape index: {}]   ;;  %s1423_s3 = inlined_call_operand.hbm [shape: f32[1,136,128], index: 3, kind: output, shape index: {}]  }
   0x1   :  { %9 = vsyncpa [#allocation6], 0 }
   0x2   :  { %10 = vsyncpa [#allocation4], 0  ;;  %s1205_s12 = smov [#allocation5]   ;;  %s1111_s16 = scalar_lea.hbm %s1421_s1, 4352 }
   0x3   :  { %s28_s13 = sshll.u32 %s1205_s12, 4  ;;  %p1112_p0 = scmp.ne.s32.totalorder %s1421_s1, %s1111_s16  ;;  %s29_s13 = int_to_ptr.vmem [resolvable:$true] %s28_s13 }
   0x4   :  { %p1115_p1 = scmp.lt.u32.totalorder %s1111_s16, %s1421_s1 }
   0x6   :  { %p1117_p2 = pnand %p1115_p1, %p1112_p0 }
   0x8   :  { %1120 = shalt.err (!%p1117_p2)
}
   0x9   :  { %s1121_s21 = scalar_lea.vmem %s29_s13, 4352  ;;  %p1126_p4 = scmp.lt.s32.totalorder %s29_s13, %s29_s13 }
   0xa   :  { %p1122_p3 = scmp.ne.s32.totalorder %s29_s13, %s1121_s21  ;;  %p1127_p5 = scmp.lt.s32.totalorder %s1121_s21, %s1121_s21 }
   0xc   :  { %p1128_p6 = por %p1127_p5, %p1126_p4 }
   0xe   :  { %p1129_p7 = pnand %p1128_p6, %p1122_p3 }
  0x10   :  { %1132 = shalt.err (!%p1129_p7)
}
  0x11   :  { %s1206_s22 = smov 128   ;;  %s1207_s23 = smov 8  }
  0x12   :  { %34 = dma.hbm_to_vmem [thread:$0]  %s1421_s1, 4352, %s29_s13, [#allocation6], %s1206_s22, %s1206_s22, %s1207_s23  }
  0x13   :  { %s1208_s26 = smov [#allocation2]   ;;  %s1133_s30 = scalar_lea.hbm %s1420_s0, 2048 }
  0x14   :  { %s16_s27 = sshll.u32 %s1208_s26, 4  ;;  %p1134_p8 = scmp.ne.s32.totalorder %s1420_s0, %s1133_s30  ;;  %s17_s27 = int_to_ptr.vmem [resolvable:$true] %s16_s27 }
  0x15   :  { %p1137_p9 = scmp.lt.u32.totalorder %s1133_s30, %s1420_s0 }
  0x17   :  { %p1139_p10 = pnand %p1137_p9, %p1134_p8 }
  0x19   :  { %1142 = shalt.err (!%p1139_p10)
}
  0x1a   :  { %s1143_s8 = scalar_lea.vmem %s17_s27, 2048  ;;  %p1148_p12 = scmp.lt.s32.totalorder %s17_s27, %s17_s27 }
  0x1b   :  { %p1144_p11 = scmp.ne.s32.totalorder %s17_s27, %s1143_s8  ;;  %p1149_p13 = scmp.lt.s32.totalorder %s1143_s8, %s1143_s8 }
  0x1d   :  { %p1150_p0 = por %p1149_p13, %p1148_p12 }
  0x1f   :  { %p1151_p1 = pnand %p1150_p0, %p1144_p11 }
  0x21   :  { %1154 = shalt.err (!%p1151_p1)
}
  0x22   :  { %s1209_s1 = smov 64   ;;  %s1210_s9 = smov 4  }
  0x23   :  { %22 = dma.hbm_to_vmem [thread:$0]  %s1420_s0, 2048, %s17_s27, [#allocation3], %s1209_s1, %s1209_s1, %s1210_s9  }
  0x24   :  { %s1211_s12 = smov [#allocation7]   ;;  %s1155_s16 = scalar_lea.hbm %s1422_s2, 2048 }
  0x25   :  { %s40_s13 = sshll.u32 %s1211_s12, 4  ;;  %p1156_p2 = scmp.ne.s32.totalorder %s1422_s2, %s1155_s16  ;;  %s41_s13 = int_to_ptr.vmem [resolvable:$true] %s40_s13 }
  0x26   :  { %p1159_p3 = scmp.lt.u32.totalorder %s1155_s16, %s1422_s2 }
  0x28   :  { %p1161_p4 = pnand %p1159_p3, %p1156_p2 }
  0x2a   :  { %1164 = shalt.err (!%p1161_p4)
}
  0x2b   :  { %s1165_s21 = scalar_lea.vmem %s41_s13, 2048  ;;  %p1170_p6 = scmp.lt.s32.totalorder %s41_s13, %s41_s13 }
  0x2c   :  { %p1166_p5 = scmp.ne.s32.totalorder %s41_s13, %s1165_s21  ;;  %p1171_p7 = scmp.lt.s32.totalorder %s1165_s21, %s1165_s21 }
  0x2e   :  { %p1172_p8 = por %p1171_p7, %p1170_p6 }
  0x30   :  { %p1173_p9 = pnand %p1172_p8, %p1166_p5 }
  0x32   :  { %1176 = shalt.err (!%p1173_p9)
}
  0x33   :  { %46 = dma.hbm_to_vmem [thread:$0]  %s1422_s2, 2048, %s41_s13, [#allocation6], %s1206_s22, %s1206_s22, %s1207_s23  }
  0x34   :  { %1199 = dma.done.wait [#allocation3], 2048  }
  0x35   :  { %1200 = vsyncadd [#allocation3], 4294965248 }
  0x36   :  { %1201 = dma.done.wait [#allocation6], 6400  }
  0x37   :  { %1202 = vsyncadd [#allocation6], 4294960896  ;;  %v1212_v0 = vmov 0   ;;  %v1044_v1 = vld [vmem:[#allocation2] sm:$0xff]   ;;  %v1045_v2 = vld [vmem:[#allocation2 + $0x8] sm:$0xff]   ;;  %v1213_v53 = vmov 0.0|0.0  }
  0x38   :  { %389 = vmatprep.subr.bf16.mxu0 %v1212_v0  ;;  %1000 = vmatprep.subr.bf16.mxu1 %v1212_v0  ;;  %v1046_v3 = vld [vmem:[#allocation2 + $0x10] sm:$0xff]   ;;  %v1047_v4 = vld [vmem:[#allocation2 + $0x18] sm:$0xff]   ;;  %v1048_v5 = vld [vmem:[#allocation2 + $0x20] sm:$0xff]   ;;  %vm1214_vm0 = vmmov 0   ;;  %s1216_s2 = smov [#allocation8]  }
  0x39   :  { %390 = vmatpush1.bf16.msra.mxu0 %v1044_v1  ;;  %1016 = vmatpush1.bf16.msra.mxu1 %v1044_v1  ;;  %v1062_v6 = vld [vmem:[#allocation5 + $0x4] ss:$8 sps:$4 sm:$0xff]   ;;  %v1050_v8 = vld [vmem:[#allocation2 + $0x30] sm:$0xff]   ;;  %v1051_v10 = vld [vmem:[#allocation2 + $0x38] sm:$0xff]   ;;  %s797_s25 = sshll.u32 %s1216_s2, 4  ;;  %s798_s25 = int_to_ptr.vmem [resolvable:$true] %s797_s25 }
  0x3a   :  { %391 = vmatprep.subr.bf16.mxu0 %v1212_v0  ;;  %1001 = vmatprep.subr.bf16.mxu1 %v1212_v0  ;;  %v1049_v7 = vld [vmem:[#allocation2 + $0x28] sm:$0xff]   ;;  %v1077_v9 = vld [vmem:[#allocation5 + $0xd4] ss:$8 sps:$4 sm:$0xff]   ;;  %v1052_v11 = vld [vmem:[#allocation2 + $0x40] sm:$0xff]   ;;  %s1177_s26 = scalar_lea.vmem %s798_s25, 2176  ;;  %p1182_p11 = scmp.lt.s32.totalorder %s798_s25, %s798_s25 }
  0x3b   :  { %421 = vmatprep.mubr.bf16.mxu0 %v1062_v6  ;;  %525 = vmatprep.mubr.bf16.mxu1 %v1077_v9  ;;  %v1053_v12 = vld [vmem:[#allocation2 + $0x48] sm:$0xff]   ;;  %v1054_v13 = vld [vmem:[#allocation2 + $0x50] sm:$0xff]   ;;  %v1055_v14 = vld [vmem:[#allocation2 + $0x58] sm:$0xff]   ;;  %p1178_p10 = scmp.ne.s32.totalorder %s798_s25, %s1177_s26  ;;  %p1183_p12 = scmp.lt.s32.totalorder %s1177_s26, %s1177_s26 }
  0x3c   :  { %v1056_v15 = vld [vmem:[#allocation2 + $0x60] sm:$0xff]   ;;  %v1057_v16 = vld [vmem:[#allocation2 + $0x68] sm:$0xff]   ;;  %v1058_v17 = vld [vmem:[#allocation2 + $0x70] sm:$0xff]  }
  0x3d   :  { %392 = vmatpush1.bf16.msra.mxu0 %v1045_v2  ;;  %1017 = vmatpush1.bf16.msra.mxu1 %v1045_v2  ;;  %v1059_v18 = vld [vmem:[#allocation2 + $0x78] sm:$0xff]   ;;  %v1060_v19 = vld [vmem:[#allocation5] ss:$8 sps:$4 sm:$0xff]   ;;  %v1081_v22 = vld [vmem:[#allocation5 + $0xe4] ss:$8 sps:$4 sm:$0xff]   ;;  %p1184_p13 = por %p1183_p12, %p1182_p11 }
  0x3e   :  { %393 = vmatprep.subr.bf16.mxu0 %v1212_v0  ;;  %1002 = vmatprep.subr.bf16.mxu1 %v1212_v0  ;;  %v1075_v20 = vld [vmem:[#allocation5 + $0xd0] ss:$8 sps:$4 sm:$0xff]   ;;  %v1063_v21 = vld [vmem:[#allocation5 + $0x14] ss:$8 sps:$4 sm:$0xff]   ;;  %v1083_v24 = vld [vmem:[#allocation5 + $0xe0] ss:$8 sps:$4 sm:$0xff]  }
  0x3f   :  { %v1065_v23 = vld [vmem:[#allocation5 + $0x10] ss:$8 sps:$4 sm:$0xff]   ;;  %v1066_v25 = vld [vmem:[#allocation5 + $0x24] ss:$8 sps:$4 sm:$0xff]   ;;  %v1087_v26 = vld [vmem:[#allocation5 + $0xf4] ss:$8 sps:$4 sm:$0xff]   ;;  %p1185_p0 = pnand %p1184_p13, %p1178_p10 }
  0x40   :  { %v1068_v27 = vld [vmem:[#allocation5 + $0x20] ss:$8 sps:$4 sm:$0xff]   ;;  %v1089_v28 = vld [vmem:[#allocation5 + $0xf0] ss:$8 sps:$4 sm:$0xff]   ;;  %v1069_v29 = vld [vmem:[#allocation5 + $0x34] ss:$8 sps:$4 sm:$0xff]  }
  0x41   :  { %394 = vmatpush1.bf16.msra.mxu0 %v1046_v3  ;;  %1018 = vmatpush1.bf16.msra.mxu1 %v1046_v3  ;;  %v1093_v30 = vld [vmem:[#allocation5 + $0x104] ss:$8 sps:$4 sm:$0xff]   ;;  %v1071_v31 = vld [vmem:[#allocation5 + $0x30] ss:$8 sps:$4 sm:$0xff]   ;;  %v1095_v32 = vld [vmem:[#allocation5 + $0x100] ss:$8 sps:$4 sm:$0xff]  }
  0x42   :  { %395 = vmatprep.subr.bf16.mxu0 %v1212_v0  ;;  %1003 = vmatprep.subr.bf16.mxu1 %v1212_v0  ;;  %v1072_v33 = vld [vmem:[#allocation5 + $0x44] ss:$8 sps:$4 sm:$0xff]   ;;  %v1074_v34 = vld [vmem:[#allocation5 + $0x40] ss:$8 sps:$4 sm:$0xff]   ;;  %v1078_v35 = vld [vmem:[#allocation5 + $0x54] ss:$8 sps:$4 sm:$0xff]  }
  0x43   :  { %v1080_v36 = vld [vmem:[#allocation5 + $0x50] ss:$8 sps:$4 sm:$0xff]   ;;  %v1084_v37 = vld [vmem:[#allocation5 + $0x64] ss:$8 sps:$4 sm:$0xff]   ;;  %v1086_v38 = vld [vmem:[#allocation5 + $0x60] ss:$8 sps:$4 sm:$0xff]  }
  0x44   :  { %v1090_v39 = vld [vmem:[#allocation5 + $0x74] ss:$8 sps:$4 sm:$0xff]   ;;  %v1092_v40 = vld [vmem:[#allocation5 + $0x70] ss:$8 sps:$4 sm:$0xff]   ;;  %v1096_v41 = vld [vmem:[#allocation5 + $0x84] ss:$8 sps:$4 sm:$0xff]  }
  0x45   :  { %396 = vmatpush1.bf16.msra.mxu0 %v1047_v4  ;;  %1019 = vmatpush1.bf16.msra.mxu1 %v1047_v4  ;;  %v1098_v42 = vld [vmem:[#allocation5 + $0x80] ss:$8 sps:$4 sm:$0xff]   ;;  %v1099_v43 = vld [vmem:[#allocation5 + $0x94] ss:$8 sps:$4 sm:$0xff]   ;;  %v1101_v44 = vld [vmem:[#allocation5 + $0x90] ss:$8 sps:$4 sm:$0xff]  }
  0x46   :  { %397 = vmatprep.subr.bf16.mxu0 %v1212_v0  ;;  %1004 = vmatprep.subr.bf16.mxu1 %v1212_v0  ;;  %v1102_v45 = vld [vmem:[#allocation5 + $0xa4] ss:$8 sps:$4 sm:$0xff]   ;;  %v1104_v46 = vld [vmem:[#allocation5 + $0xa0] ss:$8 sps:$4 sm:$0xff]   ;;  %v1105_v47 = vld [vmem:[#allocation5 + $0xb4] ss:$8 sps:$4 sm:$0xff]  }
  0x47   :  { %v1107_v48 = vld [vmem:[#allocation5 + $0xb0] ss:$8 sps:$4 sm:$0xff]   ;;  %v1108_v49 = vld [vmem:[#allocation5 + $0xc4] ss:$8 sps:$4 sm:$0xff]   ;;  %v1110_v50 = vld [vmem:[#allocation5 + $0xc0] ss:$8 sps:$4 sm:$0xff]  }
  0x48   :  { %v609_v51 = vld [vmem:[#allocation7] sm:$0xff]  ;;  %v610_v52 = vld [vmem:[#allocation7 + $0x8] sm:$0xff]  ;;  %v611_v55 = vld [vmem:[#allocation7 + $0x10] sm:$0xff] }
  0x49   :  { %398 = vmatpush1.bf16.msra.mxu0 %v1048_v5  ;;  %1020 = vmatpush1.bf16.msra.mxu1 %v1048_v5  ;;  %v977_v54 = vpack.c.bf16 %v610_v52, %v609_v51  ;;  %v612_v56 = vld [vmem:[#allocation7 + $0x18] sm:$0xff]  ;;  %v613_v58 = vld [vmem:[#allocation7 + $0x20] sm:$0xff]  ;;  %v614_v59 = vld [vmem:[#allocation7 + $0x28] sm:$0xff] }
  0x4a   :  { %399 = vmatprep.subr.bf16.mxu0 %v1212_v0  ;;  %1005 = vmatprep.subr.bf16.mxu1 %v1212_v0  ;;  %v980_v57 = vpack.c.bf16 %v612_v56, %v611_v55  ;;  %v983_v60 = vpack.c.bf16 %v614_v59, %v613_v58  ;;  %v615_v61 = vld [vmem:[#allocation7 + $0x30] sm:$0xff]  ;;  %v616_v62 = vld [vmem:[#allocation7 + $0x38] sm:$0xff]  ;;  %v618_v1 = vld [vmem:[#allocation7 + $0x48] sm:$0xff] }
  0x4b   :  { %v986_v63 = vpack.c.bf16 %v616_v62, %v615_v61  ;;  %v619_v3 = vld [vmem:[#allocation7 + $0x50] sm:$0xff]  ;;  %v620_v4 = vld [vmem:[#allocation7 + $0x58] sm:$0xff]  ;;  %v621_v6 = vld [vmem:[#allocation7 + $0x60] sm:$0xff] }
  0x4c   :  { %v992_v5 = vpack.c.bf16 %v620_v4, %v619_v3  ;;  %v623_v9 = vld [vmem:[#allocation7 + $0x70] sm:$0xff] }
  0x4d   :  { %400 = vmatpush1.bf16.msra.mxu0 %v1049_v7  ;;  %1021 = vmatpush1.bf16.msra.mxu1 %v1049_v7  ;;  %v622_v7 = vld [vmem:[#allocation7 + $0x68] sm:$0xff] }
  0x4e   :  { %401 = vmatprep.subr.bf16.mxu0 %v1212_v0  ;;  %1006 = vmatprep.subr.bf16.mxu1 %v1212_v0 }
  0x51   :  { %402 = vmatpush1.bf16.msra.mxu0 %v1050_v8  ;;  %1022 = vmatpush1.bf16.msra.mxu1 %v1050_v8  ;;  %v995_v8 = vpack.c.bf16 %v622_v7, %v621_v6 }
  0x52   :  { %403 = vmatprep.subr.bf16.mxu0 %v1212_v0  ;;  %1007 = vmatprep.subr.bf16.mxu1 %v1212_v0 }
  0x55   :  { %404 = vmatpush1.bf16.msra.mxu0 %v1051_v10  ;;  %1023 = vmatpush1.bf16.msra.mxu1 %v1051_v10  ;;  %v624_v10 = vld [vmem:[#allocation7 + $0x78] sm:$0xff] }
  0x56   :  { %405 = vmatprep.subr.bf16.mxu0 %v1212_v0  ;;  %1008 = vmatprep.subr.bf16.mxu1 %v1212_v0 }
  0x59   :  { %406 = vmatpush1.bf16.msra.mxu0 %v1052_v11  ;;  %1024 = vmatpush1.bf16.msra.mxu1 %v1052_v11  ;;  %v998_v11 = vpack.c.bf16 %v624_v10, %v623_v9 }
  0x5a   :  { %407 = vmatprep.subr.bf16.mxu0 %v1212_v0  ;;  %1009 = vmatprep.subr.bf16.mxu1 %v1212_v0 }
  0x5d   :  { %408 = vmatpush1.bf16.msra.mxu0 %v1053_v12  ;;  %1025 = vmatpush1.bf16.msra.mxu1 %v1053_v12  ;;  %v1215_v12 = vmov 0.0  }
  0x5e   :  { %409 = vmatprep.subr.bf16.mxu0 %v1212_v0  ;;  %1010 = vmatprep.subr.bf16.mxu1 %v1212_v0 }
  0x61   :  { %410 = vmatpush1.bf16.msra.mxu0 %v1054_v13  ;;  %1026 = vmatpush1.bf16.msra.mxu1 %v1054_v13 }
  0x62   :  { %411 = vmatprep.subr.bf16.mxu0 %v1212_v0  ;;  %1011 = vmatprep.subr.bf16.mxu1 %v1212_v0 }
  0x65   :  { %412 = vmatpush1.bf16.msra.mxu0 %v1055_v14  ;;  %1027 = vmatpush1.bf16.msra.mxu1 %v1055_v14 }
  0x66   :  { %413 = vmatprep.subr.bf16.mxu0 %v1212_v0  ;;  %1012 = vmatprep.subr.bf16.mxu1 %v1212_v0 }
  0x69   :  { %414 = vmatpush1.bf16.msra.mxu0 %v1056_v15  ;;  %1028 = vmatpush1.bf16.msra.mxu1 %v1056_v15 }
  0x6a   :  { %415 = vmatprep.subr.bf16.mxu0 %v1212_v0  ;;  %1013 = vmatprep.subr.bf16.mxu1 %v1212_v0 }
  0x6d   :  { %416 = vmatpush1.bf16.msra.mxu0 %v1057_v16  ;;  %1029 = vmatpush1.bf16.msra.mxu1 %v1057_v16 }
  0x6e   :  { %417 = vmatprep.subr.bf16.mxu0 %v1212_v0  ;;  %1014 = vmatprep.subr.bf16.mxu1 %v1212_v0 }
  0x71   :  { %418 = vmatpush1.bf16.msra.mxu0 %v1058_v17  ;;  %1030 = vmatpush1.bf16.msra.mxu1 %v1058_v17 }
  0x72   :  { %419 = vmatprep.subr.bf16.mxu0 %v1212_v0  ;;  %1015 = vmatprep.subr.bf16.mxu1 %v1212_v0  ;;  %v617_v0 = vld [vmem:[#allocation7 + $0x40] sm:$0xff] }
  0x73   :  { %v989_v2 = vpack.c.bf16 %v618_v1, %v617_v0 }
  0x75   :  { %420 = vmatpush1.bf16.msra.mxu0 %v1059_v18  ;;  %1031 = vmatpush1.bf16.msra.mxu1 %v1059_v18 }
  0x76   :  { %976 = vmatprep.subr.bf16.mxu1 %v1213_v53 }
  0x78   :  { %422 = vmatmul.mubr.bf16.vlgmr.msra.gmra.mrb[0].mxu0 %v1060_v19  ;;  %526 = vmatmul.mubr.bf16.vlgmr.msra.gmra.mrb[0].mxu1 %v1075_v20 }
  0x79   :  { %429 = vmatprep.mubr.bf16.mxu0 %v1063_v21  ;;  %533 = vmatprep.mubr.bf16.mxu1 %v1081_v22 }
  0x7a   :  { %978 = vmatpush3.bf16.msra.mxu1 %v977_v54 }
  0x7b   :  { %979 = vmatprep.subr.bf16.mxu1 %v1213_v53 }
  0x7e   :  { %981 = vmatpush3.bf16.msra.mxu1 %v980_v57 }
  0x7f   :  { %982 = vmatprep.subr.bf16.mxu1 %v1213_v53 }
  0x80   :  { %430 = vmatmul.mubr.bf16.gmra.mrb[4].mxu0 %v1065_v23  ;;  %534 = vmatmul.mubr.bf16.gmra.mrb[4].mxu1 %v1083_v24 }
  0x81   :  { %437 = vmatprep.mubr.bf16.mxu0 %v1066_v25  ;;  %541 = vmatprep.mubr.bf16.mxu1 %v1087_v26 }
  0x82   :  { %984 = vmatpush3.bf16.msra.mxu1 %v983_v60 }
  0x83   :  { %985 = vmatprep.subr.bf16.mxu1 %v1213_v53 }
  0x86   :  { %987 = vmatpush3.bf16.msra.mxu1 %v986_v63 }
  0x87   :  { %988 = vmatprep.subr.bf16.mxu1 %v1213_v53 }
  0x88   :  { %438 = vmatmul.mubr.bf16.gmra.mrb[8].mxu0 %v1068_v27  ;;  %542 = vmatmul.mubr.bf16.gmra.mrb[8].mxu1 %v1089_v28 }
  0x89   :  { %445 = vmatprep.mubr.bf16.mxu0 %v1069_v29  ;;  %549 = vmatprep.mubr.bf16.mxu1 %v1093_v30 }
  0x8a   :  { %990 = vmatpush3.bf16.msra.mxu1 %v989_v2 }
  0x8b   :  { %991 = vmatprep.subr.bf16.mxu1 %v1213_v53 }
  0x8e   :  { %993 = vmatpush3.bf16.msra.mxu1 %v992_v5 }
  0x8f   :  { %994 = vmatprep.subr.bf16.mxu1 %v1213_v53 }
  0x90   :  { %446 = vmatmul.mubr.bf16.gmra.mrb[12].mxu0 %v1071_v31  ;;  %550 = vmatmul.mubr.bf16.gmra.mrb[12].mxu1 %v1095_v32 }
  0x91   :  { %453 = vmatprep.mubr.bf16.mxu0 %v1072_v33  ;;  %925 = vmatprep.mubr.msk.f32.mxu1 %vm1214_vm0, %v1215_v12 }
  0x92   :  { %996 = vmatpush3.bf16.msra.mxu1 %v995_v8 }
  0x93   :  { %997 = vmatprep.subr.bf16.mxu1 %v1213_v53 }
  0x96   :  { %999 = vmatpush3.bf16.msra.mxu1 %v998_v11 }
  0x98   :  { %454 = vmatmul.mubr.bf16.gmra.mrb[16].mxu0 %v1074_v34 }
  0x99   :  { %461 = vmatprep.mubr.bf16.mxu0 %v1078_v35 }
  0xa0   :  { %462 = vmatmul.mubr.bf16.gmra.mrb[20].mxu0 %v1080_v36 }
  0xa1   :  { %469 = vmatprep.mubr.bf16.mxu0 %v1084_v37 }
  0xa8   :  { %470 = vmatmul.mubr.bf16.gmra.mrb[24].mxu0 %v1086_v38 }
  0xa9   :  { %477 = vmatprep.mubr.bf16.mxu0 %v1090_v39 }
  0xb0   :  { %478 = vmatmul.mubr.bf16.gmra.mrb[28].mxu0 %v1092_v40 }
  0xb1   :  { %485 = vmatprep.mubr.bf16.mxu0 %v1096_v41 }
  0xb8   :  { %486 = vmatmul.mubr.bf16.gmra.mrb[32].mxu0 %v1098_v42 }
  0xb9   :  { %493 = vmatprep.mubr.bf16.mxu0 %v1099_v43 }
  0xc0   :  { %494 = vmatmul.mubr.bf16.gmra.mrb[36].mxu0 %v1101_v44 }
  0xc1   :  { %501 = vmatprep.mubr.bf16.mxu0 %v1102_v45 }
  0xc8   :  { %502 = vmatmul.mubr.bf16.gmra.mrb[40].mxu0 %v1104_v46 }
  0xc9   :  { %509 = vmatprep.mubr.bf16.mxu0 %v1105_v47 }
  0xd0   :  { %510 = vmatmul.mubr.bf16.gmra.mrb[44].mxu0 %v1107_v48 }
  0xd1   :  { %517 = vmatprep.mubr.bf16.mxu0 %v1108_v49 }
  0xd8   :  { %518 = vmatmul.mubr.bf16.gmra.mrb[48].mxu0 %v1110_v50 }
 0x14b   :  { %v1313_v13 = vpop.f32.mrb[0].mxu0  ;;  %v527_v14 = vpop.f32.mrb[0].mxu1 }
 0x14c   :  { %v425_v15 = vpop.f32.mrb[1].mxu0  ;;  %v529_v16 = vpop.f32.mrb[1].mxu1  ;;  %v584_v47 = vmul.f32 %v527_v14, %v527_v14 }
 0x14d   :  { %v1315_v17 = vpop.f32.mrb[2].mxu0  ;;  %v530_v18 = vpop.f32.mrb[2].mxu1 }
 0x14e   :  { %v428_v19 = vpop.f32.mrb[3].mxu0  ;;  %v532_v20 = vpop.f32.mrb[3].mxu1  ;;  %v585_v52 = vmul.f32 %v530_v18, %v530_v18 }
 0x153   :  { %v1317_v21 = vpop.f32.mrb[4].mxu0  ;;  %v535_v22 = vpop.f32.mrb[4].mxu1 }
 0x154   :  { %v433_v23 = vpop.f32.mrb[5].mxu0  ;;  %v537_v24 = vpop.f32.mrb[5].mxu1  ;;  %v586_v56 = vmul.f32 %v535_v22, %v535_v22 }
 0x155   :  { %v1319_v25 = vpop.f32.mrb[6].mxu0  ;;  %v538_v26 = vpop.f32.mrb[6].mxu1 }
 0x156   :  { %v436_v27 = vpop.f32.mrb[7].mxu0  ;;  %v540_v28 = vpop.f32.mrb[7].mxu1  ;;  %v587_v62 = vmul.f32 %v538_v26, %v538_v26 }
 0x157   :  { %v558_v28 = vmul.f32 %v1313_v13, %v1313_v13 }
 0x15b   :  { %v1321_v29 = vpop.f32.mrb[8].mxu0  ;;  %v543_v30 = vpop.f32.mrb[8].mxu1 }
 0x15c   :  { %v441_v31 = vpop.f32.mrb[9].mxu0  ;;  %v545_v32 = vpop.f32.mrb[9].mxu1  ;;  %v588_v2 = vmul.f32 %v543_v30, %v543_v30 }
 0x15d   :  { %v1323_v33 = vpop.f32.mrb[10].mxu0  ;;  %v546_v34 = vpop.f32.mrb[10].mxu1 }
 0x15e   :  { %v444_v35 = vpop.f32.mrb[11].mxu0  ;;  %v548_v36 = vpop.f32.mrb[11].mxu1  ;;  %v589_v8 = vmul.f32 %v546_v34, %v546_v34 }
 0x15f   :  { %v559_v36 = vmul.f32 %v1315_v17, %v1315_v17 }
 0x163   :  { %v1325_v37 = vpop.f32.mrb[12].mxu0  ;;  %v551_v38 = vpop.f32.mrb[12].mxu1 }
 0x164   :  { %v449_v39 = vpop.f32.mrb[13].mxu0  ;;  %v553_v40 = vpop.f32.mrb[13].mxu1  ;;  %v590_v14 = vmul.f32 %v551_v38, %v551_v38 }
 0x165   :  { %v1327_v41 = vpop.f32.mrb[14].mxu0  ;;  %v554_v42 = vpop.f32.mrb[14].mxu1 }
 0x166   :  { %v452_v43 = vpop.f32.mrb[15].mxu0  ;;  %v556_v44 = vpop.f32.mrb[15].mxu1  ;;  %v591_v22 = vmul.f32 %v554_v42, %v554_v42  ;;  %v560_v42 = vmul.f32 %v1317_v21, %v1317_v21  ;;  %v562_v21 = vmul.f32 %v1321_v29, %v1321_v29  ;;  %v564_v29 = vmul.f32 %v1325_v37, %v1325_v37 }
 0x16b   :  { %v1329_v45 = vpop.f32.mrb[16].mxu0 }
 0x16c   :  { %v457_v46 = vpop.f32.mrb[17].mxu0  ;;  %v566_v37 = vmul.f32 %v1329_v45, %v1329_v45 }
 0x16d   :  { %v458_v48 = vpop.f32.mrb[18].mxu0 }
 0x16e   :  { %v567_v49 = vmul.f32 %v458_v48, %v458_v48  ;;  %v460_v50 = vpop.f32.mrb[19].mxu0  ;;  %v561_v48 = vmul.f32 %v1319_v25, %v1319_v25  ;;  %v563_v25 = vmul.f32 %v1323_v33, %v1323_v33  ;;  %v565_v33 = vmul.f32 %v1327_v41, %v1327_v41 }
 0x170   :  { %v1331_v51 = vadd.f32 %v584_v47, %v567_v49 }
 0x173   :  { %v463_v53 = vpop.f32.mrb[20].mxu0 }
 0x174   :  { %v568_v54 = vmul.f32 %v463_v53, %v463_v53  ;;  %v465_v55 = vpop.f32.mrb[21].mxu0 }
 0x175   :  { %v466_v57 = vpop.f32.mrb[22].mxu0 }
 0x176   :  { %v1333_v58 = vadd.f32 %v585_v52, %v568_v54  ;;  %v569_v59 = vmul.f32 %v466_v57, %v466_v57  ;;  %v468_v60 = vpop.f32.mrb[23].mxu0 }
 0x178   :  { %v1335_v61 = vadd.f32 %v586_v56, %v569_v59 }
 0x17b   :  { %v471_v63 = vpop.f32.mrb[24].mxu0 }
 0x17c   :  { %v570_v0 = vmul.f32 %v471_v63, %v471_v63  ;;  %v473_v1 = vpop.f32.mrb[25].mxu0 }
 0x17d   :  { %v474_v3 = vpop.f32.mrb[26].mxu0 }
 0x17e   :  { %v1337_v4 = vadd.f32 %v587_v62, %v570_v0  ;;  %v571_v5 = vmul.f32 %v474_v3, %v474_v3  ;;  %v476_v6 = vpop.f32.mrb[27].mxu0 }
 0x180   :  { %v1339_v7 = vadd.f32 %v588_v2, %v571_v5 }
 0x183   :  { %v479_v9 = vpop.f32.mrb[28].mxu0 }
 0x184   :  { %v572_v10 = vmul.f32 %v479_v9, %v479_v9  ;;  %v481_v11 = vpop.f32.mrb[29].mxu0 }
 0x185   :  { %v482_v15 = vpop.f32.mrb[30].mxu0 }
 0x186   :  { %v1341_v16 = vadd.f32 %v589_v8, %v572_v10  ;;  %v573_v18 = vmul.f32 %v482_v15, %v482_v15  ;;  %v484_v19 = vpop.f32.mrb[31].mxu0 }
 0x188   :  { %v1343_v20 = vadd.f32 %v590_v14, %v573_v18 }
 0x18b   :  { %v487_v23 = vpop.f32.mrb[32].mxu0 }
 0x18c   :  { %v574_v24 = vmul.f32 %v487_v23, %v487_v23  ;;  %v489_v26 = vpop.f32.mrb[33].mxu0 }
 0x18d   :  { %v490_v27 = vpop.f32.mrb[34].mxu0 }
 0x18e   :  { %v1347_v30 = vadd.f32 %v591_v22, %v574_v24  ;;  %v575_v31 = vmul.f32 %v490_v27, %v490_v27  ;;  %v492_v32 = vpop.f32.mrb[35].mxu0 }
 0x190   :  { %v592_v34 = vadd.f32 %v575_v31, %v558_v28 }
 0x192   :  { %926 = vmatmul.mubr.f32.vlgmr.msra.gmra.mrb[16].mxu1 %v592_v34 }
 0x193   :  { %v495_v35 = vpop.f32.mrb[36].mxu0  ;;  %928 = vmatprep.mubr.msk.f32.mxu1 %vm1214_vm0, %v1215_v12 }
 0x194   :  { %v576_v38 = vmul.f32 %v495_v35, %v495_v35  ;;  %v497_v39 = vpop.f32.mrb[37].mxu0 }
 0x195   :  { %v498_v40 = vpop.f32.mrb[38].mxu0 }
 0x196   :  { %v593_v13 = vadd.f32 %v576_v38, %v559_v36  ;;  %v577_v43 = vmul.f32 %v498_v40, %v498_v40  ;;  %v500_v44 = vpop.f32.mrb[39].mxu0 }
 0x198   :  { %v594_v46 = vadd.f32 %v577_v43, %v560_v42  ;;  %929 = vmatmul.mubr.f32.gmra.mrb[18].mxu1 %v593_v13 }
 0x199   :  { %931 = vmatprep.mubr.msk.f32.mxu1 %vm1214_vm0, %v1215_v12 }
 0x19b   :  { %v503_v47 = vpop.f32.mrb[40].mxu0 }
 0x19c   :  { %v578_v49 = vmul.f32 %v503_v47, %v503_v47  ;;  %v505_v17 = vpop.f32.mrb[41].mxu0  ;;  %932 = vmatmul.mubr.f32.gmra.mrb[20].mxu1 %v594_v46 }
 0x19d   :  { %v506_v50 = vpop.f32.mrb[42].mxu0  ;;  %934 = vmatprep.mubr.msk.f32.mxu1 %vm1214_vm0, %v1215_v12 }
 0x19e   :  { %v595_v52 = vadd.f32 %v578_v49, %v561_v48  ;;  %v579_v53 = vmul.f32 %v506_v50, %v506_v50  ;;  %v508_v54 = vpop.f32.mrb[43].mxu0 }
 0x1a0   :  { %v596_v55 = vadd.f32 %v579_v53, %v562_v21  ;;  %935 = vmatmul.mubr.f32.gmra.mrb[22].mxu1 %v595_v52 }
 0x1a1   :  { %937 = vmatprep.mubr.msk.f32.mxu1 %vm1214_vm0, %v1215_v12 }
 0x1a3   :  { %v511_v56 = vpop.f32.mrb[44].mxu0 }
 0x1a4   :  { %v580_v57 = vmul.f32 %v511_v56, %v511_v56  ;;  %v513_v59 = vpop.f32.mrb[45].mxu0  ;;  %938 = vmatmul.mubr.f32.gmra.mrb[24].mxu1 %v596_v55 }
 0x1a5   :  { %v514_v60 = vpop.f32.mrb[46].mxu0  ;;  %940 = vmatprep.mubr.msk.f32.mxu1 %vm1214_vm0, %v1215_v12 }
 0x1a6   :  { %v597_v62 = vadd.f32 %v580_v57, %v563_v25  ;;  %v581_v63 = vmul.f32 %v514_v60, %v514_v60  ;;  %v516_v0 = vpop.f32.mrb[47].mxu0 }
 0x1a8   :  { %v598_v1 = vadd.f32 %v581_v63, %v564_v29  ;;  %941 = vmatmul.mubr.f32.gmra.mrb[26].mxu1 %v597_v62 }
 0x1a9   :  { %943 = vmatprep.mubr.msk.f32.mxu1 %vm1214_vm0, %v1215_v12 }
 0x1ab   :  { %v519_v2 = vpop.f32.mrb[48].mxu0 }
 0x1ac   :  { %v582_v3 = vmul.f32 %v519_v2, %v519_v2  ;;  %v521_v5 = vpop.f32.mrb[49].mxu0  ;;  %944 = vmatmul.mubr.f32.gmra.mrb[28].mxu1 %v598_v1 }
 0x1ad   :  { %v522_v6 = vpop.f32.mrb[50].mxu0  ;;  %946 = vmatprep.mubr.msk.f32.mxu1 %vm1214_vm0, %v1215_v12 }
 0x1ae   :  { %v599_v8 = vadd.f32 %v582_v3, %v565_v33  ;;  %v583_v9 = vmul.f32 %v522_v6, %v522_v6  ;;  %v524_v10 = vpop.f32.mrb[51].mxu0 }
 0x1b0   :  { %v600_v11 = vadd.f32 %v583_v9, %v566_v37  ;;  %947 = vmatmul.mubr.f32.gmra.mrb[30].mxu1 %v599_v8 }
 0x1b1   :  { %949 = vmatprep.mubr.msk.f32.mxu1 %vm1214_vm0, %v1215_v12 }
 0x1b4   :  { %950 = vmatmul.mubr.f32.gmra.mrb[32].mxu1 %v600_v11 }
 0x1b5   :  { %952 = vmatprep.mubr.msk.f32.mxu1 %vm1214_vm0, %v1215_v12 }
 0x1b8   :  { %953 = vmatmul.mubr.f32.gmra.mrb[34].mxu1 %v1331_v51 }
 0x1b9   :  { %955 = vmatprep.mubr.msk.f32.mxu1 %vm1214_vm0, %v1215_v12 }
 0x1bc   :  { %956 = vmatmul.mubr.f32.gmra.mrb[36].mxu1 %v1333_v58 }
 0x1bd   :  { %958 = vmatprep.mubr.msk.f32.mxu1 %vm1214_vm0, %v1215_v12 }
 0x1c0   :  { %959 = vmatmul.mubr.f32.gmra.mrb[38].mxu1 %v1335_v61 }
 0x1c1   :  { %961 = vmatprep.mubr.msk.f32.mxu1 %vm1214_vm0, %v1215_v12 }
 0x1c4   :  { %962 = vmatmul.mubr.f32.gmra.mrb[40].mxu1 %v1337_v4 }
 0x1c5   :  { %964 = vmatprep.mubr.msk.f32.mxu1 %vm1214_vm0, %v1215_v12 }
 0x1c8   :  { %965 = vmatmul.mubr.f32.gmra.mrb[42].mxu1 %v1339_v7 }
 0x1c9   :  { %967 = vmatprep.mubr.msk.f32.mxu1 %vm1214_vm0, %v1215_v12 }
 0x1cc   :  { %968 = vmatmul.mubr.f32.gmra.mrb[44].mxu1 %v1341_v16 }
 0x1cd   :  { %970 = vmatprep.mubr.msk.f32.mxu1 %vm1214_vm0, %v1215_v12 }
 0x1d0   :  { %971 = vmatmul.mubr.f32.gmra.mrb[46].mxu1 %v1343_v20 }
 0x1d1   :  { %973 = vmatprep.mubr.msk.f32.mxu1 %vm1214_vm0, %v1215_v12 }
 0x1d4   :  { %974 = vmatmul.mubr.f32.gmra.mrb[48].mxu1 %v1347_v30 }
 0x265   :  { %v691_v41 = vpop.f32.mrb[16].mxu1 }
 0x266   :  { %775 = vst [vmem:[#allocation8] sm:$0xff] %v691_v41  ;;  %v927_v45 = vpop.f32.mrb[17].mxu1 }
 0x26b   :  { %v696_v51 = vpop.f32.mrb[18].mxu1 }
 0x26c   :  { %776 = vst [vmem:[#allocation8 + $0x8] sm:$0xff] %v696_v51  ;;  %v930_v58 = vpop.f32.mrb[19].mxu1 }
 0x26f   :  { %v701_v61 = vpop.f32.mrb[20].mxu1 }
 0x270   :  { %777 = vst [vmem:[#allocation8 + $0x10] sm:$0xff] %v701_v61  ;;  %v933_v4 = vpop.f32.mrb[21].mxu1 }
 0x273   :  { %v706_v7 = vpop.f32.mrb[22].mxu1 }
 0x274   :  { %778 = vst [vmem:[#allocation8 + $0x18] sm:$0xff] %v706_v7  ;;  %v936_v14 = vpop.f32.mrb[23].mxu1 }
 0x277   :  { %v711_v15 = vpop.f32.mrb[24].mxu1 }
 0x278   :  { %779 = vst [vmem:[#allocation8 + $0x20] sm:$0xff] %v711_v15  ;;  %v939_v16 = vpop.f32.mrb[25].mxu1 }
 0x27b   :  { %v716_v18 = vpop.f32.mrb[26].mxu1 }
 0x27c   :  { %780 = vst [vmem:[#allocation8 + $0x28] sm:$0xff] %v716_v18  ;;  %v942_v12 = vpop.f32.mrb[27].mxu1 }
 0x27f   :  { %v721_v19 = vpop.f32.mrb[28].mxu1 }
 0x280   :  { %781 = vst [vmem:[#allocation8 + $0x30] sm:$0xff] %v721_v19  ;;  %v945_v20 = vpop.f32.mrb[29].mxu1 }
 0x283   :  { %v726_v22 = vpop.f32.mrb[30].mxu1 }
 0x284   :  { %782 = vst [vmem:[#allocation8 + $0x38] sm:$0xff] %v726_v22  ;;  %v948_v23 = vpop.f32.mrb[31].mxu1 }
 0x287   :  { %v731_v24 = vpop.f32.mrb[32].mxu1 }
 0x288   :  { %783 = vst [vmem:[#allocation8 + $0x40] sm:$0xff] %v731_v24  ;;  %v951_v26 = vpop.f32.mrb[33].mxu1 }
 0x28b   :  { %v736_v27 = vpop.f32.mrb[34].mxu1 }
 0x28c   :  { %784 = vst [vmem:[#allocation8 + $0x48] sm:$0xff] %v736_v27  ;;  %v954_v28 = vpop.f32.mrb[35].mxu1 }
 0x28f   :  { %v741_v30 = vpop.f32.mrb[36].mxu1 }
 0x290   :  { %785 = vst [vmem:[#allocation8 + $0x50] sm:$0xff] %v741_v30  ;;  %v957_v31 = vpop.f32.mrb[37].mxu1 }
 0x293   :  { %v746_v32 = vpop.f32.mrb[38].mxu1 }
 0x294   :  { %786 = vst [vmem:[#allocation8 + $0x58] sm:$0xff] %v746_v32  ;;  %v960_v34 = vpop.f32.mrb[39].mxu1 }
 0x297   :  { %v751_v35 = vpop.f32.mrb[40].mxu1 }
 0x298   :  { %787 = vst [vmem:[#allocation8 + $0x60] sm:$0xff] %v751_v35  ;;  %v963_v36 = vpop.f32.mrb[41].mxu1 }
 0x29b   :  { %v756_v38 = vpop.f32.mrb[42].mxu1 }
 0x29c   :  { %788 = vst [vmem:[#allocation8 + $0x68] sm:$0xff] %v756_v38  ;;  %v966_v39 = vpop.f32.mrb[43].mxu1 }
 0x29f   :  { %v761_v40 = vpop.f32.mrb[44].mxu1 }
 0x2a0   :  { %789 = vst [vmem:[#allocation8 + $0x70] sm:$0xff] %v761_v40  ;;  %v969_v42 = vpop.f32.mrb[45].mxu1 }
 0x2a3   :  { %v766_v13 = vpop.f32.mrb[46].mxu1 }
 0x2a4   :  { %790 = vst [vmem:[#allocation8 + $0x78] sm:$0xff] %v766_v13  ;;  %v972_v43 = vpop.f32.mrb[47].mxu1 }
 0x2a7   :  { %v771_v44 = vpop.f32.mrb[48].mxu1 }
 0x2a8   :  { %791 = vst [vmem:[#allocation8 + $0x80] sm:$0xff] %v771_v44  ;;  %v975_v46 = vpop.f32.mrb[49].mxu1 }
 0x2a9   :  { %1188 = shalt.err (!%p1185_p0)
}
 0x2aa   :  { %s1189_s29 = scalar_lea.hbm %s1423_s3, 2176 }
 0x2ab   :  { %p1190_p1 = scmp.ne.s32.totalorder %s1423_s3, %s1189_s29  ;;  %p1193_p2 = scmp.lt.u32.totalorder %s1189_s29, %s1423_s3 }
 0x2ad   :  { %p1195_p3 = pnand %p1193_p2, %p1190_p1 }
 0x2af   :  { %1198 = shalt.err (!%p1195_p3)
}
 0x2b0   :  { %803 = dma.vmem_to_hbm [thread:$0]  %s798_s25, 2176, %s1423_s3, [#allocation4], %s1206_s22, %s1206_s22, %s1207_s23  }
 0x2b1   :  { %1203 = dma.done.wait [#allocation4], 2176  }
 0x2b2   :  { %1204 = vsyncadd [#allocation4], 4294965120 }
 0x2b3   :  { %807 = vsyncpa [#allocation3], 1 }
 0x2b4   :  { %808 = vsyncpa [#allocation6], 1 }
 0x2b5   :  { %809 = vsyncpa [#allocation4], 1 }

</bundles_post_ra>
